<compile_context>
chip_gen: v7x
topology: tpu7x:2x2x1
jax: 0.10.0
libtpu: 0.0.40
codegen_flags: <defaults>
</compile_context>

<pallas_src>
import jax
import jax.numpy as jnp
from jax.experimental import pallas as pl
from jax.experimental.pallas import tpu as pltpu

LANE = 128


def _round_up(x, m):
    return ((x + m - 1) // m) * m


def _pick_row_tile(n, min_steps=8):
    """Largest power-of-two tile in [128, 1024] that still yields >= min_steps
    grid steps (pipelining + megacore); fall back to 128 for small n."""
    for tile in (1024, 512, 256, 128):
        if _round_up(n, tile) // tile >= min_steps:
            return tile
    return 128


# ---------------------------------------------------------------------------
# Kernel
# ---------------------------------------------------------------------------
def _mlpae_kernel(x_ref, w1, b1, w2, w3, w4, w5, w6, out_ref):
    """Fused 6-layer MLP autoencoder forward for one row tile.

    Matmuls: bf16 operands on the MXU with f32 accumulation. Layer-1 bias is an
    explicit f32 add (it also plants a 1.0 "carrier" in a padding column);
    biases of layers 2..6 are pre-folded into a padding row of each weight, so
    those layers are just matmul (+ fused ReLU/bf16 cast).
    """
    f32 = jnp.float32
    bf16 = jnp.bfloat16

    # encoder
    h = jnp.dot(x_ref[...], w1[...], preferred_element_type=f32) + b1[...]
    h = jnp.maximum(h, 0.0).astype(bf16)                                   # L1 + ReLU
    h = jnp.maximum(jnp.dot(h, w2[...], preferred_element_type=f32),
                    0.0).astype(bf16)                                      # L2 + ReLU
    h = jnp.dot(h, w3[...], preferred_element_type=f32).astype(bf16)       # L3 (no ReLU)
    # decoder
    h = jnp.maximum(jnp.dot(h, w4[...], preferred_element_type=f32),
                    0.0).astype(bf16)                                      # L4 + ReLU
    h = jnp.maximum(jnp.dot(h, w5[...], preferred_element_type=f32),
                    0.0).astype(bf16)                                      # L5 + ReLU
    out_ref[...] = jnp.dot(h, w6[...],
                           preferred_element_type=f32).astype(out_ref.dtype)  # L6


# ---------------------------------------------------------------------------
# One-time parameter preparation (padding + bias folding)
# ---------------------------------------------------------------------------
def prepare_mlpae_params(params):
    """Pad the 6 (W[in,out], b[1,out]) f32 pairs to lane-dense bf16 and fold
    biases of layers 2..6 into the weight padding. Call ONCE, reuse per forward."""
    assert len(params) == 6
    bf16 = jnp.bfloat16

    # --- layer 1: fan-in stays unpadded; explicit f32 bias with 1.0 carrier ---
    w0, b0 = params[0]
    b0 = jnp.asarray(b0).reshape(1, -1)
    fi0, fo0 = w0.shape
    fo0_p = _round_up(fo0, LANE)
    w1_p = jnp.zeros((fi0, fo0_p), bf16).at[:, :fo0].set(w0.astype(bf16))
    b1_p = jnp.zeros((1, fo0_p), jnp.float32).at[:, :fo0].set(b0.astype(jnp.float32))
    b1_p = b1_p.at[0, fo0].set(1.0)          # carrier 1.0 for folded biases downstream

    weights = [w1_p]
    prev_fo = fo0
    for li in range(1, 6):
        w, b = params[li]
        b = jnp.asarray(b).reshape(1, -1)
        fi, fo = w.shape
        assert fi == prev_fo, "layer fan-in must match previous fan-out"
        fi_p, fo_p = _round_up(fi, LANE), _round_up(fo, LANE)
        assert fi < fi_p, "need a spare padding row for the folded bias"
        wp = jnp.zeros((fi_p, fo_p), bf16)
        wp = wp.at[:fi, :fo].set(w.astype(bf16))
        wp = wp.at[fi, :fo].set(b[0].astype(bf16))   # folded bias row (hit by carrier)
        if li != 5:
            wp = wp.at[fi, fo].set(1.0)              # carry the 1.0 to the next layer
        weights.append(wp)
        prev_fo = fo

    return {
        "w1": w1_p, "b1": b1_p, "rest": tuple(weights[1:]),
        "in_feats": fi0, "out_feats": prev_fo,
        "out_padded": _round_up(prev_fo, LANE),
    }


# ---------------------------------------------------------------------------
# Forward wrapper
# ---------------------------------------------------------------------------
def mlpae_forward(adj_dense, x, prepared, *, row_tile=None, out_dtype=jnp.float32):
    """Pallas forward of MLPAE. Returns (dense adjacency, reconstruction)."""
    n, in_feats = x.shape
    assert in_feats == prepared["in_feats"]

    if row_tile is None:
        row_tile = _pick_row_tile(n)
    n_pad = _round_up(n, row_tile)

    x_bf = x.astype(jnp.bfloat16)
    if n_pad != n:
        x_bf = jnp.pad(x_bf, ((0, n_pad - n), (0, 0)))

    w1, b1 = prepared["w1"], prepared["b1"]
    rest = prepared["rest"]
    out_p = prepared["out_padded"]

    in_specs = [
        pl.BlockSpec((row_tile, in_feats), lambda i: (i, 0)),   # x: row-tiled, unpadded K
        pl.BlockSpec(w1.shape, lambda i: (0, 0)),               # grid-invariant weights
        pl.BlockSpec(b1.shape, lambda i: (0, 0)),
    ]
    for wp in rest:
        in_specs.append(pl.BlockSpec(wp.shape, lambda i: (0, 0)))

    flops = 2 * n_pad * (w1.shape[0] * w1.shape[1]
                         + sum(wp.shape[0] * wp.shape[1] for wp in rest))
    bytes_accessed = (x_bf.size * 2 + w1.size * 2 + b1.size * 4
                      + sum(wp.size * 2 for wp in rest)
                      + n_pad * out_p * 2)                      # bf16 output stream

    out = pl.pallas_call(
        _mlpae_kernel,
        out_shape=jax.ShapeDtypeStruct((n_pad, out_p), jnp.bfloat16),
        grid_spec=pl.GridSpec(
            grid=(n_pad // row_tile,),
            in_specs=in_specs,
            out_specs=pl.BlockSpec((row_tile, out_p), lambda i: (i, 0)),
        ),
        compiler_params=pltpu.CompilerParams(
            dimension_semantics=("parallel",),
            vmem_limit_bytes=8 * 1024 * 1024,   # footprint ~1 MiB/step; plenty on v7x
        ),
        cost_estimate=pl.CostEstimate(
            flops=int(flops), transcendentals=0,
            bytes_accessed=int(bytes_accessed)),
    )(x_bf, w1, b1, *rest)

    recon = out[:n, :prepared["out_feats"]].astype(out_dtype)

    # g.adj().to_dense() is a pure pass-through of the graph structure.
    return adj_dense, recon


# ---------------------------------------------------------------------------
# Init + references
# ---------------------------------------------------------------------------
def init_mlp_params(key, in_feats, out_feats):
    """Mimic torch.nn.Linear default init (uniform +-1/sqrt(fan_in)).
    Weights stored as [in, out] (already transposed vs torch)."""
    dims = [(in_feats, out_feats * 3),
            (out_feats * 3, int(out_feats * 2)),
            (int(out_feats * 2), out_feats)]
    params = []
    for (fi, fo) in dims:
        key, kw, kb = jax.random.split(key, 3)
        bound = 1.0 / (fi ** 0.5)
        w = jax.random.uniform(kw, (fi, fo), jnp.float32, -bound, bound)
        b = jax.random.uniform(kb, (1, fo), jnp.float32, -bound, bound)
        params.append((w, b))
    return key, params


def reference_forward_f32(x, params):
    """Pure-JAX f32 reference matching the PyTorch module semantics."""
    h = x
    for li, (w, b) in enumerate(params):
        h = h @ w + b
        if li % 3 != 2:           # ReLU after first two layers of each MLP
            h = jnp.maximum(h, 0.0)
    return h


def reference_forward_kernel_math(x, params):
    """Pure-JAX reference mirroring the kernel's numerics: bf16 operands, f32
    accumulation, bf16 biases for layers 2..6 (folded), bf16 inter-layer and
    output casts."""
    h = x.astype(jnp.bfloat16)
    for li, (w, b) in enumerate(params):
        acc = jnp.dot(h, w.astype(jnp.bfloat16),
                      preferred_element_type=jnp.float32)
        if li == 0:
            acc = acc + b.astype(jnp.float32)
        else:
            acc = acc + b.astype(jnp.bfloat16).astype(jnp.float32)
        if li % 3 != 2:
            acc = jnp.maximum(acc, 0.0)
        h = acc.astype(jnp.bfloat16)
    return h.astype(jnp.float32)


# ---------------------------------------------------------------------------
if __name__ == "__main__":
    key = jax.random.PRNGKey(0)

    n = 1024          # number of nodes / rows
    in_feats = 16
    hidden_feats = 8

    key, enc_params = init_mlp_params(key, in_feats, hidden_feats)
    key, dec_params = init_mlp_params(key, hidden_feats, in_feats)
    params = enc_params + dec_params

    prepared = prepare_mlpae_params(params)   # one-time padding + bias folding

    key, kx, ka = jax.random.split(key, 3)
    x = jax.random.normal(kx, (n, in_feats), jnp.float32)
    # synthetic dense adjacency (stand-in for g.adj().to_dense())
    adj = (jax.random.uniform(ka, (n, n)) > 0.7).astype(jnp.float32)

    # TODO(synk): dropout with p > 0 (training mode) is not implemented; the
    # module default p=0 makes it an identity, which is what we compute.
    adj_out, recon = mlpae_forward(adj, x, prepared)
    adj_out = jax.block_until_ready(adj_out)
    recon = jax.block_until_ready(recon)

    assert recon.shape == (n, in_feats)
    assert adj_out.shape == (n, n)

    # Tight check against a reference using the same bf16-operand math.
    ref_k = reference_forward_kernel_math(x, params)
    assert jnp.allclose(recon, ref_k, atol=1.5e-2, rtol=1.5e-2), (
        float(jnp.max(jnp.abs(recon - ref_k))))

    # Loose check against the full-f32 module semantics (bf16 quantization noise).
    ref_f32 = reference_forward_f32(x, params)
    assert jnp.max(jnp.abs(recon - ref_f32)) < 6e-2, (
        float(jnp.max(jnp.abs(recon - ref_f32))))

    # Row-padding path (n not a multiple of the row tile).
    n2 = 300
    key, kx2, ka2 = jax.random.split(key, 3)
    x2 = jax.random.normal(kx2, (n2, in_feats), jnp.float32)
    adj2 = (jax.random.uniform(ka2, (n2, n2)) > 0.7).astype(jnp.float32)
    adj2_out, recon2 = mlpae_forward(adj2, x2, prepared)
    recon2 = jax.block_until_ready(recon2)
    assert recon2.shape == (n2, in_feats)
    ref2 = reference_forward_kernel_math(x2, params)
    assert jnp.allclose(recon2, ref2, atol=1.5e-2, rtol=1.5e-2), (
        float(jnp.max(jnp.abs(recon2 - ref2))))

    print("KERNEL_OK")
</pallas_src>

<mosaic_0001>
module attributes {stable_mosaic.version = 11 : i64} {
  func.func @_mlpae_kernel(%arg0: i32, %arg1: memref<128x16xbf16, #tpu.memory_space<vmem>>, %arg2: memref<16x128xbf16, #tpu.memory_space<vmem>>, %arg3: memref<1x128xf32, #tpu.memory_space<vmem>>, %arg4: memref<128x128xbf16, #tpu.memory_space<vmem>>, %arg5: memref<128x128xbf16, #tpu.memory_space<vmem>>, %arg6: memref<128x128xbf16, #tpu.memory_space<vmem>>, %arg7: memref<128x128xbf16, #tpu.memory_space<vmem>>, %arg8: memref<128x128xbf16, #tpu.memory_space<vmem>>, %arg9: memref<128x128xbf16, #tpu.memory_space<vmem>>) attributes {dimension_semantics = [#tpu.dimension_semantics<parallel>], iteration_bounds = array<i64: 8>, scalar_prefetch = 0 : i64, scratch_operands = 0 : i64, tpu.core_type = #tpu.core_type<tc>, window_params = [{transform_indices = @transform_0, window_bounds = array<i64: 128, 16>}, {pipeline_mode = #tpu.pipeline_mode<synchronous>, transform_indices = @transform_1, window_bounds = array<i64: 16, 128>}, {pipeline_mode = #tpu.pipeline_mode<synchronous>, transform_indices = @transform_2, window_bounds = array<i64: 1, 128>}, {pipeline_mode = #tpu.pipeline_mode<synchronous>, transform_indices = @transform_3, window_bounds = array<i64: 128, 128>}, {pipeline_mode = #tpu.pipeline_mode<synchronous>, transform_indices = @transform_4, window_bounds = array<i64: 128, 128>}, {pipeline_mode = #tpu.pipeline_mode<synchronous>, transform_indices = @transform_5, window_bounds = array<i64: 128, 128>}, {pipeline_mode = #tpu.pipeline_mode<synchronous>, transform_indices = @transform_6, window_bounds = array<i64: 128, 128>}, {pipeline_mode = #tpu.pipeline_mode<synchronous>, transform_indices = @transform_7, window_bounds = array<i64: 128, 128>}, {transform_indices = @transform_8, window_bounds = array<i64: 128, 128>}]} {
    %c0 = arith.constant 0 : index
    %c0_0 = arith.constant 0 : index
    %0 = vector.load %arg1[%c0, %c0_0] : memref<128x16xbf16, #tpu.memory_space<vmem>>, vector<128x16xbf16>
    %c0_1 = arith.constant 0 : index
    %c0_2 = arith.constant 0 : index
    %1 = vector.load %arg2[%c0_1, %c0_2] : memref<16x128xbf16, #tpu.memory_space<vmem>>, vector<16x128xbf16>
    %cst = arith.constant dense<0.000000e+00> : vector<128x128xf32>
    %2 = tpu.matmul %0, %1, %cst {dimension_numbers = #tpu.dot_dimension_numbers<[1], [0], [0], [1], [0, 0, 1, 1], [], []>} : vector<128x16xbf16>, vector<16x128xbf16>, vector<128x128xf32> -> vector<128x128xf32>
    %c0_3 = arith.constant 0 : index
    %c0_4 = arith.constant 0 : index
    %3 = vector.load %arg3[%c0_3, %c0_4] : memref<1x128xf32, #tpu.memory_space<vmem>>, vector<1x128xf32>
    %4 = vector.broadcast %3 : vector<1x128xf32> to vector<128x128xf32>
    %5 = arith.addf %2, %4 : vector<128x128xf32>
    %cst_5 = arith.constant 0.000000e+00 : f32
    %6 = vector.broadcast %cst_5 : f32 to vector<128x128xf32>
    %7 = arith.maximumf %5, %6 : vector<128x128xf32>
    %8 = arith.truncf %7 : vector<128x128xf32> to vector<128x128xbf16>
    %c0_6 = arith.constant 0 : index
    %c0_7 = arith.constant 0 : index
    %9 = vector.load %arg4[%c0_6, %c0_7] : memref<128x128xbf16, #tpu.memory_space<vmem>>, vector<128x128xbf16>
    %cst_8 = arith.constant dense<0.000000e+00> : vector<128x128xf32>
    %10 = tpu.matmul %8, %9, %cst_8 {dimension_numbers = #tpu.dot_dimension_numbers<[1], [0], [0], [1], [0, 0, 1, 1], [], []>} : vector<128x128xbf16>, vector<128x128xbf16>, vector<128x128xf32> -> vector<128x128xf32>
    %cst_9 = arith.constant 0.000000e+00 : f32
    %11 = vector.broadcast %cst_9 : f32 to vector<128x128xf32>
    %12 = arith.maximumf %10, %11 : vector<128x128xf32>
    %13 = arith.truncf %12 : vector<128x128xf32> to vector<128x128xbf16>
    %c0_10 = arith.constant 0 : index
    %c0_11 = arith.constant 0 : index
    %14 = vector.load %arg5[%c0_10, %c0_11] : memref<128x128xbf16, #tpu.memory_space<vmem>>, vector<128x128xbf16>
    %cst_12 = arith.constant dense<0.000000e+00> : vector<128x128xf32>
    %15 = tpu.matmul %13, %14, %cst_12 {dimension_numbers = #tpu.dot_dimension_numbers<[1], [0], [0], [1], [0, 0, 1, 1], [], []>} : vector<128x128xbf16>, vector<128x128xbf16>, vector<128x128xf32> -> vector<128x128xf32>
    %16 = arith.truncf %15 : vector<128x128xf32> to vector<128x128xbf16>
    %c0_13 = arith.constant 0 : index
    %c0_14 = arith.constant 0 : index
    %17 = vector.load %arg6[%c0_13, %c0_14] : memref<128x128xbf16, #tpu.memory_space<vmem>>, vector<128x128xbf16>
    %cst_15 = arith.constant dense<0.000000e+00> : vector<128x128xf32>
    %18 = tpu.matmul %16, %17, %cst_15 {dimension_numbers = #tpu.dot_dimension_numbers<[1], [0], [0], [1], [0, 0, 1, 1], [], []>} : vector<128x128xbf16>, vector<128x128xbf16>, vector<128x128xf32> -> vector<128x128xf32>
    %cst_16 = arith.constant 0.000000e+00 : f32
    %19 = vector.broadcast %cst_16 : f32 to vector<128x128xf32>
    %20 = arith.maximumf %18, %19 : vector<128x128xf32>
    %21 = arith.truncf %20 : vector<128x128xf32> to vector<128x128xbf16>
    %c0_17 = arith.constant 0 : index
    %c0_18 = arith.constant 0 : index
    %22 = vector.load %arg7[%c0_17, %c0_18] : memref<128x128xbf16, #tpu.memory_space<vmem>>, vector<128x128xbf16>
    %cst_19 = arith.constant dense<0.000000e+00> : vector<128x128xf32>
    %23 = tpu.matmul %21, %22, %cst_19 {dimension_numbers = #tpu.dot_dimension_numbers<[1], [0], [0], [1], [0, 0, 1, 1], [], []>} : vector<128x128xbf16>, vector<128x128xbf16>, vector<128x128xf32> -> vector<128x128xf32>
    %cst_20 = arith.constant 0.000000e+00 : f32
    %24 = vector.broadcast %cst_20 : f32 to vector<128x128xf32>
    %25 = arith.maximumf %23, %24 : vector<128x128xf32>
    %26 = arith.truncf %25 : vector<128x128xf32> to vector<128x128xbf16>
    %c0_21 = arith.constant 0 : index
    %c0_22 = arith.constant 0 : index
    %27 = vector.load %arg8[%c0_21, %c0_22] : memref<128x128xbf16, #tpu.memory_space<vmem>>, vector<128x128xbf16>
    %cst_23 = arith.constant dense<0.000000e+00> : vector<128x128xf32>
    %28 = tpu.matmul %26, %27, %cst_23 {dimension_numbers = #tpu.dot_dimension_numbers<[1], [0], [0], [1], [0, 0, 1, 1], [], []>} : vector<128x128xbf16>, vector<128x128xbf16>, vector<128x128xf32> -> vector<128x128xf32>
    %29 = arith.truncf %28 : vector<128x128xf32> to vector<128x128xbf16>
    %c0_24 = arith.constant 0 : index
    %c0_25 = arith.constant 0 : index
    %30 = vector.load %arg9[%c0_24, %c0_25] : memref<128x128xbf16, #tpu.memory_space<vmem>>, vector<128x128xbf16>
    tpu.vector_store %arg9[%c0_24, %c0_25], %29 {strides = array<i32>} : memref<128x128xbf16, #tpu.memory_space<vmem>>, vector<128x128xbf16>,
    return
  }
  func.func @transform_0(%arg0: i32) -> (i32, i32) {
    %c0_i32 = arith.constant 0 : i32
    %c0_i32_0 = arith.constant 0 : i32
    return %arg0, %c0_i32 : i32, i32
  }
  func.func @transform_1(%arg0: i32) -> (i32, i32) {
    %c0_i32 = arith.constant 0 : i32
    %c0_i32_0 = arith.constant 0 : i32
    %c0_i32_1 = arith.constant 0 : i32
    return %c0_i32, %c0_i32_0 : i32, i32
  }
  func.func @transform_2(%arg0: i32) -> (i32, i32) {
    %c0_i32 = arith.constant 0 : i32
    %c0_i32_0 = arith.constant 0 : i32
    %c0_i32_1 = arith.constant 0 : i32
    return %c0_i32, %c0_i32_0 : i32, i32
  }
  func.func @transform_3(%arg0: i32) -> (i32, i32) {
    %c0_i32 = arith.constant 0 : i32
    %c0_i32_0 = arith.constant 0 : i32
    %c0_i32_1 = arith.constant 0 : i32
    return %c0_i32, %c0_i32_0 : i32, i32
  }
  func.func @transform_4(%arg0: i32) -> (i32, i32) {
    %c0_i32 = arith.constant 0 : i32
    %c0_i32_0 = arith.constant 0 : i32
    %c0_i32_1 = arith.constant 0 : i32
    return %c0_i32, %c0_i32_0 : i32, i32
  }
  func.func @transform_5(%arg0: i32) -> (i32, i32) {
    %c0_i32 = arith.constant 0 : i32
    %c0_i32_0 = arith.constant 0 : i32
    %c0_i32_1 = arith.constant 0 : i32
    return %c0_i32, %c0_i32_0 : i32, i32
  }
  func.func @transform_6(%arg0: i32) -> (i32, i32) {
    %c0_i32 = arith.constant 0 : i32
    %c0_i32_0 = arith.constant 0 : i32
    %c0_i32_1 = arith.constant 0 : i32
    return %c0_i32, %c0_i32_0 : i32, i32
  }
  func.func @transform_7(%arg0: i32) -> (i32, i32) {
    %c0_i32 = arith.constant 0 : i32
    %c0_i32_0 = arith.constant 0 : i32
    %c0_i32_1 = arith.constant 0 : i32
    return %c0_i32, %c0_i32_0 : i32, i32
  }
  func.func @transform_8(%arg0: i32) -> (i32, i32) {
    %c0_i32 = arith.constant 0 : i32
    %c0_i32_0 = arith.constant 0 : i32
    return %arg0, %c0_i32 : i32, i32
  }
}

</mosaic_0001>

<bundles_post_ra>
// kernel: tpu_custom_call.1
= control target key start
LH: loop header
LB: loop body
LE: loop exit
PB: predicated region body
PF: predicated region fallthrough
CT: control target
= control target key end

     0   :  { %13 = vsyncpa [#allocation3], 0  ;;  %s2441_s0 = inlined_call_operand.vmem [shape: bf16[1024,16], index: 0, kind: input, shape index: {}]   ;;  %s2442_s1 = inlined_call_operand.vmem [shape: bf16[16,128], index: 1, kind: input, shape index: {}]   ;;  %s2443_s2 = inlined_call_operand.vmem [shape: f32[1,128], index: 2, kind: input, shape index: {}]   ;;  %s2444_s3 = inlined_call_operand.vmem [shape: bf16[128,128], index: 3, kind: input, shape index: {}]   ;;  %s2445_s4 = inlined_call_operand.vmem [shape: bf16[128,128], index: 4, kind: input, shape index: {}]   ;;  %s2446_s5 = inlined_call_operand.vmem [shape: bf16[128,128], index: 5, kind: input, shape index: {}]   ;;  %s2447_s6 = inlined_call_operand.vmem [shape: bf16[128,128], index: 6, kind: input, shape index: {}]   ;;  %s2448_s7 = inlined_call_operand.vmem [shape: bf16[128,128], index: 7, kind: input, shape index: {}]   ;;  %s2449_s8 = inlined_call_operand.hbm [shape: bf16[1024,128], index: 8, kind: output, shape index: {}]  }
   0x1   :  { %15 = vsyncpa [#allocation3 + $0x1], 0  ;;  %s2201_s27 = smov 0   ;;  %s2203_s28 = smov 0  }
   0x2   :  { %s2205_s29 = smov 0   ;;  %s2207_s30 = smov 0  }
   0x3 LB: > { %s2222_s9 = sadd.s32 4294967295, %s2151_s30   ;;  %s1566_s10 = sadd.s32 4294967294, %s2151_s30   ;;  %s2151_s30 = sphi %s2207_s30, %s2455_s30   ;;  %s2147_s29 = sphi %s2205_s29, %s2454_s29   ;;  %s2143_s28 = sphi %s2203_s28, %s2453_s28   ;;  %s2139_s27 = sphi %s2201_s27, %s2452_s27  }
   0x4   : > { %s2226_s11 = sadd.s32 1, %s2151_s30   ;;  %s201_s12 = sadd.s32 1, %s2147_s29 }
   0x5   : > { %s198_s13 = ssub.s32 %s2151_s30, %s2226_s11  ;;  %p211_p0 = scmp.ne.s32.totalorder %s2147_s29, %s2143_s28 }
   0x6   : > { %p199_p1 = scmp.eq.s32.totalorder %s198_s13, 0  ;;  %p212_p2 = scmp.eq.s32.totalorder %s2222_s9, 7 }
   0x7   : > { %p217_p3 = scmp.ne.s32.totalorder %s2143_s28, %s2139_s27  ;;  %p218_p4 = scmp.eq.s32.totalorder %s1566_s10, 7 }
   0x8   : > { %s2237_s14 = scalar_select %p199_p1, %s2147_s29, %s201_s12  }
   0x9   : > { %p2239_p5 = por %p212_p2, %p211_p0  ;;  %p2243_p6 = por %p218_p4, %p217_p3 }
   0xa   : > { %p1569_p7 = scmp.ge.s32.totalorder %s2151_s30, 1  ;;  %p266_p8 = scmp.lt.s32.totalorder %s2151_s30, 9 }
   0xc   : > { %p267_p9 = pnand %p1569_p7, %p266_p8 }
   0xd   : > { %v2040_v0 = vld [vmem:[%s2442_s1] sm:$0xff] (!%p267_p9)   ;;  %s1571_s19 = sshll.u32 (!%p267_p9), %s2222_s9, 4  ;;  %v2050_v2 = vld [vmem:[%s2444_s3 + $0x8] sm:$0xff] (!%p267_p9)   ;;  %vm379_vm0 = vcmask (!%p267_p9), 130048   ;;  %v2051_v3 = vld [vmem:[%s2444_s3 + $0x10] sm:$0xff] (!%p267_p9)   ;;  %s297_s13 = sand.u32 (!%p267_p9), 1, %s2143_s28  }
   0xe   : > { %270 = sbr.rel (%p267_p9) target bundleno = 1382 (0x566), region = 52  ;;  %p301_p10 = scmp.lt.s32.totalorder (!%p267_p9), %s1571_s19, 127  ;;  %1805 = vmatprep.subr.bf16.mxu0 (!%p267_p9), %v2040_v0  ;;  %v2049_v1 = vld [vmem:[%s2444_s3] sm:$0xff] (!%p267_p9)   ;;  %v2052_v7 = vld [vmem:[%s2444_s3 + $0x18] sm:$0xff] (!%p267_p9)   ;;  %v2054_v11 = vld [vmem:[%s2444_s3 + $0x28] sm:$0xff] (!%p267_p9)  }
   0xf   : > { %1806 = vmatpush3.bf16.msra.mxu0 (!%p267_p9), %v2040_v0  ;;  %1823 = vmatprep.subr.bf16.mxu1 (!%p267_p9), %v2049_v1  ;;  %v2053_v8 = vld [vmem:[%s2444_s3 + $0x20] sm:$0xff] (!%p267_p9)   ;;  %v2055_v15 = vld [vmem:[%s2444_s3 + $0x30] sm:$0xff] (!%p267_p9)   ;;  %v2056_v16 = vld [vmem:[%s2444_s3 + $0x38] sm:$0xff] (!%p267_p9)   ;;  %s1570_s17 = sshll.u32 (!%p267_p9), %s297_s13, 6  ;;  %s1668_s18 = sshll.u32 (!%p267_p9), %s2222_s9, 10 }
  0x10   : > { %1824 = vmatpush3.bf16.msra.mxu1 (!%p267_p9), %v2049_v1  ;;  %v2057_v17 = vld [vmem:[%s2445_s4] sm:$0xff] (!%p267_p9)   ;;  %v2058_v18 = vld [vmem:[%s2445_s4 + $0x8] sm:$0xff] (!%p267_p9)   ;;  %v2059_v19 = vld [vmem:[%s2445_s4 + $0x10] sm:$0xff] (!%p267_p9)   ;;  %s2394_s22 = scalar_lea.hbm (!%p267_p9), %s2449_s8, %s1668_s18  ;;  %s2400_s9 = scalar_lea.sflag (!%p267_p9), [#allocation3], %s297_s13 }
  0x11   : > { %1825 = vmatprep.subr.bf16.mxu1 (!%p267_p9), %v2050_v2  ;;  %1855 = vmatprep.subr.bf16.mxu0 (!%p267_p9), %v2057_v17  ;;  %v2060_v20 = vld [vmem:[%s2445_s4 + $0x18] sm:$0xff] (!%p267_p9)   ;;  %v2061_v21 = vld [vmem:[%s2445_s4 + $0x20] sm:$0xff] (!%p267_p9)   ;;  %v2062_v22 = vld [vmem:[%s2445_s4 + $0x28] sm:$0xff] (!%p267_p9)  }
  0x12   : > { %v1573_v23 = vld [vmem:[%s2443_s2] ss:$0 sm:$0xff] (!%p267_p9) }
  0x14   : > { %1826 = vmatpush3.bf16.msra.mxu1 (!%p267_p9), %v2050_v2 }
  0x15   : > { %s2457_s19 = smov (!%p301_p10, %s1571_s19), 127  ;;  %1827 = vmatprep.subr.bf16.mxu1 %v2051_v3 }
  0x16   : > { %s1572_s24 = sshll.u32 %s2457_s19, 2 }
  0x17   : > { %s304_s10 = scalar_lea.vmem %s2441_s0, %s1572_s24  ;;  %s2153_s24 = smov [#allocation2]  }
  0x18   : > { %v2041_v4 = vld [vmem:[%s304_s10] sm:$0xff]   ;;  %v2042_v5 = vld [vmem:[%s304_s10 + $0x8] sm:$0xff]   ;;  %v2043_v6 = vld [vmem:[%s304_s10 + $0x10] sm:$0xff]   ;;  %1828 = vmatpush3.bf16.msra.mxu1 %v2051_v3  ;;  %s2093_s25 = sshll.u32 %s2153_s24, 4  ;;  %s2094_s25 = int_to_ptr.vmem [resolvable:$false] %s2093_s25 }
  0x19   : > { %1807 = vmatprep.mubr.msk.bf16.mxu0 %vm379_vm0, %v2041_v4  ;;  %v2044_v9 = vld [vmem:[%s304_s10 + $0x18] sm:$0xff]   ;;  %1829 = vmatprep.subr.bf16.mxu1 %v2052_v7  ;;  %v2045_v10 = vld [vmem:[%s304_s10 + $0x20] sm:$0xff]   ;;  %v2046_v12 = vld [vmem:[%s304_s10 + $0x28] sm:$0xff]   ;;  %s2095_s26 = scalar_lea.vmem %s2094_s25, 2048 }
  0x1a   : > { %1808 = vmatmul.mubr.msk.bf16.vlgmr.msra.gmra.mrb[0].mxu0 %vm379_vm0, %v2042_v5  ;;  %v2047_v13 = vld [vmem:[%s304_s10 + $0x30] sm:$0xff]   ;;  %v2048_v14 = vld [vmem:[%s304_s10 + $0x38] sm:$0xff]   ;;  %s299_s10 = scalar_lea.vmem [#allocation2], %s1570_s17 }
  0x1b   : > { %1811 = vmatprep.mubr.msk.bf16.mxu0 %vm379_vm0, %v2043_v6  ;;  %1856 = vmatpush3.bf16.msra.mxu0 %v2057_v17  ;;  %v2064_v17 = vld [vmem:[%s2445_s4 + $0x38] sm:$0xff]   ;;  %s1504_s19 = sshll.u32 %s299_s10, 4  ;;  %s2396_s19 = int_to_ptr.vmem [resolvable:$true] %s1504_s19 }
  0x1c   : > { %1830 = vmatpush3.bf16.msra.mxu1 %v2052_v7  ;;  %1857 = vmatprep.subr.bf16.mxu0 %v2058_v18  ;;  %s2089_s23 = scalar_lea.vmem %s2396_s19, 1024  ;;  %p2096_p0 = scmp.lt.s32.totalorder %s2396_s19, %s2094_s25 }
  0x1d   : > { %1831 = vmatprep.subr.bf16.mxu1 %v2053_v8  ;;  %p2090_p11 = scmp.ne.s32.totalorder %s2396_s19, %s2089_s23  ;;  %p2097_p1 = scmp.lt.s32.totalorder %s2095_s26, %s2089_s23 }
  0x1f   : > { %1858 = vmatpush3.bf16.msra.mxu0 %v2058_v18  ;;  %v2065_v18 = vld [vmem:[%s2446_s5] sm:$0xff]   ;;  %p2091_p12 = pnand %p2090_p11, %p2239_p5  ;;  %p2098_p2 = por %p2097_p1, %p2096_p0 }
  0x20   : > { %1832 = vmatpush3.bf16.msra.mxu1 %v2053_v8  ;;  %1859 = vmatprep.subr.bf16.mxu0 %v2059_v19 }
  0x21   : > { %1833 = vmatprep.subr.bf16.mxu1 %v2054_v11  ;;  %p2092_p13 = pneg %p2091_p12 }
  0x22   : > { %1812 = vmatmul.mubr.msk.bf16.gmra.mrb[4].mxu0 %vm379_vm0, %v2044_v9 }
  0x23   : > { %1815 = vmatprep.mubr.msk.bf16.mxu0 %vm379_vm0, %v2045_v10  ;;  %1860 = vmatpush3.bf16.msra.mxu0 %v2059_v19  ;;  %v2066_v19 = vld [vmem:[%s2446_s5 + $0x8] sm:$0xff]   ;;  %p2099_p3 = pnand %p2098_p2, %p2092_p13 }
  0x24   : > { %1834 = vmatpush3.bf16.msra.mxu1 %v2054_v11  ;;  %1861 = vmatprep.subr.bf16.mxu0 %v2060_v20 }
  0x25   : > { %1835 = vmatprep.subr.bf16.mxu1 %v2055_v15 }
  0x27   : > { %1862 = vmatpush3.bf16.msra.mxu0 %v2060_v20  ;;  %v2067_v20 = vld [vmem:[%s2446_s5 + $0x10] sm:$0xff]  }
  0x28   : > { %1836 = vmatpush3.bf16.msra.mxu1 %v2055_v15  ;;  %1863 = vmatprep.subr.bf16.mxu0 %v2061_v21 }
  0x29   : > { %1837 = vmatprep.subr.bf16.mxu1 %v2056_v16 }
  0x2a   : > { %1816 = vmatmul.mubr.msk.bf16.gmra.mrb[8].mxu0 %vm379_vm0, %v2046_v12 }
  0x2b   : > { %1819 = vmatprep.mubr.msk.bf16.mxu0 %vm379_vm0, %v2047_v13  ;;  %1864 = vmatpush3.bf16.msra.mxu0 %v2061_v21  ;;  %v2068_v21 = vld [vmem:[%s2446_s5 + $0x18] sm:$0xff]  }
  0x2c   : > { %1838 = vmatpush3.bf16.msra.mxu1 %v2056_v16  ;;  %1865 = vmatprep.subr.bf16.mxu0 %v2062_v22  ;;  %v2063_v16 = vld [vmem:[%s2445_s4 + $0x30] sm:$0xff]  }
  0x2d   : > { %1887 = vmatprep.subr.bf16.mxu1 %v2065_v18 }
  0x2f   : > { %1866 = vmatpush3.bf16.msra.mxu0 %v2062_v22  ;;  %v2069_v22 = vld [vmem:[%s2446_s5 + $0x20] sm:$0xff]  }
  0x30   : > { %1867 = vmatprep.subr.bf16.mxu0 %v2063_v16 }
  0x32   : > { %1820 = vmatmul.mubr.msk.bf16.gmra.mrb[12].mxu0 %vm379_vm0, %v2048_v14 }
  0x33   : > { %1868 = vmatpush3.bf16.msra.mxu0 %v2063_v16 }
  0x34   : > { %1869 = vmatprep.subr.bf16.mxu0 %v2064_v17 }
  0x37   : > { %1870 = vmatpush3.bf16.msra.mxu0 %v2064_v17 }
  0xed   : > { %v1809_v24 = vpop.f32.mrb[0].mxu0 }
  0xee   : > { %v447_v25 = vadd.f32 %v1809_v24, %v1573_v23  ;;  %v438_v26 = vpop.f32.mrb[1].mxu0  ;;  %v2071_v24 = vld [vmem:[%s2446_s5 + $0x30] sm:$0xff]  }
  0xef   : > { %v439_v27 = vadd.f32 %v1573_v23, %v438_v26  ;;  %v1810_v28 = vpop.f32.mrb[2].mxu0 }
  0xf0   : > { %v450_v29 = vadd.f32 %v1810_v28, %v1573_v23  ;;  %v441_v30 = vpop.f32.mrb[3].mxu0  ;;  %v503_v32 = vmax.f32 %v447_v25, 0.0 }
  0xf1   : > { %v442_v31 = vadd.f32 %v1573_v23, %v441_v30  ;;  %v501_v34 = vmax.f32 %v439_v27, 0.0 }
  0xf2   : > { %v504_v33 = vmax.f32 %v450_v29, 0.0 }
  0xf3   : > { %v502_v35 = vmax.f32 %v442_v31, 0.0 }
  0xf4   : > { %v518_v36 = vpack.c.bf16 %v504_v33, %v503_v32 }
  0xf5   : > { %v1813_v37 = vpop.f32.mrb[4].mxu0  ;;  %v517_v38 = vpack.c.bf16 %v502_v35, %v501_v34 }
  0xf6   : > { %v463_v39 = vadd.f32 %v1813_v37, %v1573_v23  ;;  %v454_v40 = vpop.f32.mrb[5].mxu0 }
  0xf7   : > { %v455_v41 = vadd.f32 %v1573_v23, %v454_v40  ;;  %v1814_v42 = vpop.f32.mrb[6].mxu0  ;;  %1839 = vmatprep.mubr.bf16.mxu1 %v517_v38 }
  0xf8   : > { %v466_v43 = vadd.f32 %v1814_v42, %v1573_v23  ;;  %v457_v44 = vpop.f32.mrb[7].mxu0  ;;  %1840 = vmatmul.mubr.bf16.vlgmr.msra.gmra.mrb[0].mxu1 %v518_v36  ;;  %v507_v46 = vmax.f32 %v463_v39, 0.0 }
  0xf9   : > { %v458_v45 = vadd.f32 %v1573_v23, %v457_v44  ;;  %v505_v48 = vmax.f32 %v455_v41, 0.0  ;;  %1888 = vmatpush3.bf16.msra.mxu1 %v2065_v18 }
  0xfa   : > { %v508_v47 = vmax.f32 %v466_v43, 0.0  ;;  %1889 = vmatprep.subr.bf16.mxu1 %v2066_v19 }
  0xfb   : > { %v506_v49 = vmax.f32 %v458_v45, 0.0 }
  0xfc   : > { %v520_v50 = vpack.c.bf16 %v508_v47, %v507_v46 }
  0xfd   : > { %v519_v51 = vpack.c.bf16 %v506_v49, %v505_v48  ;;  %v1817_v52 = vpop.f32.mrb[8].mxu0  ;;  %1890 = vmatpush3.bf16.msra.mxu1 %v2066_v19 }
  0xfe   : > { %v479_v53 = vadd.f32 %v1817_v52, %v1573_v23  ;;  %v470_v54 = vpop.f32.mrb[9].mxu0  ;;  %1891 = vmatprep.subr.bf16.mxu1 %v2067_v20 }
  0xff   : > { %v471_v55 = vadd.f32 %v1573_v23, %v470_v54  ;;  %v1818_v56 = vpop.f32.mrb[10].mxu0  ;;  %1843 = vmatprep.mubr.bf16.mxu1 %v519_v51 }
 0x100   : > { %v482_v57 = vadd.f32 %v1818_v56, %v1573_v23  ;;  %v473_v58 = vpop.f32.mrb[11].mxu0  ;;  %1844 = vmatmul.mubr.bf16.gmra.mrb[4].mxu1 %v520_v50  ;;  %v511_v60 = vmax.f32 %v479_v53, 0.0 }
 0x101   : > { %v474_v59 = vadd.f32 %v1573_v23, %v473_v58  ;;  %v509_v62 = vmax.f32 %v471_v55, 0.0  ;;  %1892 = vmatpush3.bf16.msra.mxu1 %v2067_v20 }
 0x102   : > { %v512_v61 = vmax.f32 %v482_v57, 0.0  ;;  %1893 = vmatprep.subr.bf16.mxu1 %v2068_v21 }
 0x103   : > { %v510_v63 = vmax.f32 %v474_v59, 0.0 }
 0x104   : > { %v522_v0 = vpack.c.bf16 %v512_v61, %v511_v60 }
 0x105   : > { %v521_v1 = vpack.c.bf16 %v510_v63, %v509_v62  ;;  %v1821_v2 = vpop.f32.mrb[12].mxu0  ;;  %1894 = vmatpush3.bf16.msra.mxu1 %v2068_v21 }
 0x106   : > { %v495_v3 = vadd.f32 %v1821_v2, %v1573_v23  ;;  %v486_v4 = vpop.f32.mrb[13].mxu0  ;;  %1895 = vmatprep.subr.bf16.mxu1 %v2069_v22  ;;  %v2073_v2 = vld [vmem:[%s2447_s6] sm:$0xff]  }
 0x107   : > { %v487_v5 = vadd.f32 %v1573_v23, %v486_v4  ;;  %v1822_v6 = vpop.f32.mrb[14].mxu0  ;;  %1847 = vmatprep.mubr.bf16.mxu1 %v521_v1  ;;  %v2072_v1 = vld [vmem:[%s2446_s5 + $0x38] sm:$0xff]   ;;  %1919 = vmatprep.subr.bf16.mxu0 %v2073_v2  ;;  %v2075_v4 = vld [vmem:[%s2447_s6 + $0x10] sm:$0xff]  }
 0x108   : > { %v498_v7 = vadd.f32 %v1822_v6, %v1573_v23  ;;  %v489_v8 = vpop.f32.mrb[15].mxu0  ;;  %1848 = vmatmul.mubr.bf16.gmra.mrb[8].mxu1 %v522_v0  ;;  %v515_v10 = vmax.f32 %v495_v3, 0.0  ;;  %v2074_v3 = vld [vmem:[%s2447_s6 + $0x8] sm:$0xff]   ;;  %v2077_v6 = vld [vmem:[%s2447_s6 + $0x20] sm:$0xff]  }
 0x109   : > { %v490_v9 = vadd.f32 %v1573_v23, %v489_v8  ;;  %v513_v12 = vmax.f32 %v487_v5, 0.0  ;;  %v2070_v23 = vld [vmem:[%s2446_s5 + $0x28] sm:$0xff]   ;;  %1896 = vmatpush3.bf16.msra.mxu1 %v2069_v22  ;;  %v2076_v5 = vld [vmem:[%s2447_s6 + $0x18] sm:$0xff]  }
 0x10a   : > { %v516_v11 = vmax.f32 %v498_v7, 0.0  ;;  %1897 = vmatprep.subr.bf16.mxu1 %v2070_v23  ;;  %v2078_v7 = vld [vmem:[%s2447_s6 + $0x28] sm:$0xff]  }
 0x10b   : > { %v514_v13 = vmax.f32 %v490_v9, 0.0 }
 0x10c   : > { %v524_v14 = vpack.c.bf16 %v516_v11, %v515_v10 }
 0x10d   : > { %v523_v15 = vpack.c.bf16 %v514_v13, %v513_v12  ;;  %1898 = vmatpush3.bf16.msra.mxu1 %v2070_v23 }
 0x10e   : > { %1899 = vmatprep.subr.bf16.mxu1 %v2071_v24 }
 0x10f   : > { %1851 = vmatprep.mubr.bf16.mxu1 %v523_v15 }
 0x110   : > { %1852 = vmatmul.mubr.bf16.gmra.mrb[12].mxu1 %v524_v14 }
 0x111   : > { %1900 = vmatpush3.bf16.msra.mxu1 %v2071_v24 }
 0x112   : > { %1901 = vmatprep.subr.bf16.mxu1 %v2072_v1 }
 0x115   : > { %1902 = vmatpush3.bf16.msra.mxu1 %v2072_v1 }
 0x1cb   : > { %v1841_v25 = vpop.f32.mrb[0].mxu1 }
 0x1cc   : > { %v623_v26 = vpop.f32.mrb[1].mxu1  ;;  %v688_v28 = vmax.f32 %v1841_v25, 0.0 }
 0x1cd   : > { %v1842_v27 = vpop.f32.mrb[2].mxu1  ;;  %v686_v31 = vmax.f32 %v623_v26, 0.0 }
 0x1ce   : > { %v689_v29 = vmax.f32 %v1842_v27, 0.0  ;;  %v626_v30 = vpop.f32.mrb[3].mxu1 }
 0x1cf   : > { %v687_v32 = vmax.f32 %v626_v30, 0.0 }
 0x1d0   : > { %v703_v33 = vpack.c.bf16 %v689_v29, %v688_v28 }
 0x1d1   : > { %v702_v34 = vpack.c.bf16 %v687_v32, %v686_v31  ;;  %v2079_v32 = vld [vmem:[%s2447_s6 + $0x30] sm:$0xff]  }
 0x1d3   : > { %v1845_v35 = vpop.f32.mrb[4].mxu1  ;;  %1871 = vmatprep.mubr.bf16.mxu0 %v702_v34  ;;  %v2081_v34 = vld [vmem:[%s2448_s7] sm:$0xff]  }
 0x1d4   : > { %v639_v36 = vpop.f32.mrb[5].mxu1  ;;  %1872 = vmatmul.mubr.bf16.vlgmr.msra.gmra.mrb[16].mxu0 %v703_v33  ;;  %v692_v38 = vmax.f32 %v1845_v35, 0.0  ;;  %v2080_v33 = vld [vmem:[%s2447_s6 + $0x38] sm:$0xff]   ;;  %v2082_v35 = vld [vmem:[%s2448_s7 + $0x8] sm:$0xff]   ;;  %1983 = vmatprep.subr.bf16.mxu1 %v2081_v34 }
 0x1d5   : > { %v1846_v37 = vpop.f32.mrb[6].mxu1  ;;  %v690_v41 = vmax.f32 %v639_v36, 0.0  ;;  %1920 = vmatpush3.bf16.msra.mxu0 %v2073_v2  ;;  %v2083_v36 = vld [vmem:[%s2448_s7 + $0x10] sm:$0xff]  }
 0x1d6   : > { %v693_v39 = vmax.f32 %v1846_v37, 0.0  ;;  %v642_v40 = vpop.f32.mrb[7].mxu1  ;;  %1921 = vmatprep.subr.bf16.mxu0 %v2074_v3  ;;  %v2084_v37 = vld [vmem:[%s2448_s7 + $0x18] sm:$0xff]  }
 0x1d7   : > { %v691_v42 = vmax.f32 %v642_v40, 0.0 }
 0x1d8   : > { %v705_v43 = vpack.c.bf16 %v693_v39, %v692_v38  ;;  %v2085_v38 = vld [vmem:[%s2448_s7 + $0x20] sm:$0xff]   ;;  %v2086_v39 = vld [vmem:[%s2448_s7 + $0x28] sm:$0xff]  }
 0x1d9   : > { %v704_v44 = vpack.c.bf16 %v691_v42, %v690_v41  ;;  %1922 = vmatpush3.bf16.msra.mxu0 %v2074_v3 }
 0x1da   : > { %1923 = vmatprep.subr.bf16.mxu0 %v2075_v4 }
 0x1db   : > { %v1849_v45 = vpop.f32.mrb[8].mxu1  ;;  %1875 = vmatprep.mubr.bf16.mxu0 %v704_v44 }
 0x1dc   : > { %v655_v46 = vpop.f32.mrb[9].mxu1  ;;  %1876 = vmatmul.mubr.bf16.gmra.mrb[20].mxu0 %v705_v43  ;;  %v696_v48 = vmax.f32 %v1849_v45, 0.0 }
 0x1dd   : > { %v1850_v47 = vpop.f32.mrb[10].mxu1  ;;  %v694_v51 = vmax.f32 %v655_v46, 0.0  ;;  %1924 = vmatpush3.bf16.msra.mxu0 %v2075_v4 }
 0x1de   : > { %v697_v49 = vmax.f32 %v1850_v47, 0.0  ;;  %v658_v50 = vpop.f32.mrb[11].mxu1  ;;  %1925 = vmatprep.subr.bf16.mxu0 %v2076_v5 }
 0x1df   : > { %v695_v52 = vmax.f32 %v658_v50, 0.0 }
 0x1e0   : > { %v707_v53 = vpack.c.bf16 %v697_v49, %v696_v48 }
 0x1e1   : > { %v706_v54 = vpack.c.bf16 %v695_v52, %v694_v51  ;;  %1926 = vmatpush3.bf16.msra.mxu0 %v2076_v5 }
 0x1e2   : > { %1927 = vmatprep.subr.bf16.mxu0 %v2077_v6 }
 0x1e3   : > { %v1853_v55 = vpop.f32.mrb[12].mxu1  ;;  %1879 = vmatprep.mubr.bf16.mxu0 %v706_v54 }
 0x1e4   : > { %v671_v56 = vpop.f32.mrb[13].mxu1  ;;  %1880 = vmatmul.mubr.bf16.gmra.mrb[24].mxu0 %v707_v53  ;;  %v700_v58 = vmax.f32 %v1853_v55, 0.0 }
 0x1e5   : > { %v1854_v57 = vpop.f32.mrb[14].mxu1  ;;  %v698_v61 = vmax.f32 %v671_v56, 0.0  ;;  %1928 = vmatpush3.bf16.msra.mxu0 %v2077_v6 }
 0x1e6   : > { %v701_v59 = vmax.f32 %v1854_v57, 0.0  ;;  %v674_v60 = vpop.f32.mrb[15].mxu1  ;;  %1929 = vmatprep.subr.bf16.mxu0 %v2078_v7 }
 0x1e7   : > { %v699_v62 = vmax.f32 %v674_v60, 0.0 }
 0x1e8   : > { %v709_v63 = vpack.c.bf16 %v701_v59, %v700_v58 }
 0x1e9   : > { %v708_v0 = vpack.c.bf16 %v699_v62, %v698_v61  ;;  %1930 = vmatpush3.bf16.msra.mxu0 %v2078_v7 }
 0x1ea   : > { %1931 = vmatprep.subr.bf16.mxu0 %v2079_v32 }
 0x1eb   : > { %1883 = vmatprep.mubr.bf16.mxu0 %v708_v0 }
 0x1ec   : > { %1884 = vmatmul.mubr.bf16.gmra.mrb[28].mxu0 %v709_v63 }
 0x1ed   : > { %1932 = vmatpush3.bf16.msra.mxu0 %v2079_v32 }
 0x1ee   : > { %1933 = vmatprep.subr.bf16.mxu0 %v2080_v33 }
 0x1f1   : > { %1934 = vmatpush3.bf16.msra.mxu0 %v2080_v33 }
 0x1f2   : > { %1951 = vmatprep.subr.bf16.mxu0 %v2081_v34 }
 0x2a7   : > { %v1873_v8 = vpop.f32.mrb[16].mxu0 }
 0x2a8   : > { %v808_v9 = vpop.f32.mrb[17].mxu0 }
 0x2a9   : > { %v1874_v10 = vpop.f32.mrb[18].mxu0 }
 0x2aa   : > { %v872_v11 = vpack.c.bf16 %v1874_v10, %v1873_v8  ;;  %v811_v12 = vpop.f32.mrb[19].mxu0 }
 0x2ab   : > { %v871_v13 = vpack.c.bf16 %v811_v12, %v808_v9 }
 0x2ad   : > { %1903 = vmatprep.mubr.bf16.mxu1 %v871_v13 }
 0x2ae   : > { %1904 = vmatmul.mubr.bf16.vlgmr.msra.gmra.mrb[16].mxu1 %v872_v11 }
 0x2af   : > { %v1877_v14 = vpop.f32.mrb[20].mxu0  ;;  %1991 = vmatpush3.bf16.msra.mxu1 %v2081_v34 }
 0x2b0   : > { %v824_v15 = vpop.f32.mrb[21].mxu0  ;;  %1984 = vmatprep.subr.bf16.mxu1 %v2082_v35 }
 0x2b1   : > { %v1878_v16 = vpop.f32.mrb[22].mxu0 }
 0x2b2   : > { %v874_v17 = vpack.c.bf16 %v1878_v16, %v1877_v14  ;;  %v827_v18 = vpop.f32.mrb[23].mxu0  ;;  %v2087_v16 = vld [vmem:[%s2448_s7 + $0x30] sm:$0xff]  }
 0x2b3   : > { %v873_v19 = vpack.c.bf16 %v827_v18, %v824_v15  ;;  %1992 = vmatpush3.bf16.msra.mxu1 %v2082_v35 }
 0x2b4   : > { %1985 = vmatprep.subr.bf16.mxu1 %v2083_v36 }
 0x2b5   : > { %1907 = vmatprep.mubr.bf16.mxu1 %v873_v19 }
 0x2b6   : > { %1908 = vmatmul.mubr.bf16.gmra.mrb[20].mxu1 %v874_v17  ;;  %v2088_v17 = vld [vmem:[%s2448_s7 + $0x38] sm:$0xff]  }
 0x2b7   : > { %v1881_v20 = vpop.f32.mrb[24].mxu0  ;;  %1993 = vmatpush3.bf16.msra.mxu1 %v2083_v36 }
 0x2b8   : > { %v840_v21 = vpop.f32.mrb[25].mxu0  ;;  %1986 = vmatprep.subr.bf16.mxu1 %v2084_v37 }
 0x2b9   : > { %v1882_v22 = vpop.f32.mrb[26].mxu0 }
 0x2ba   : > { %v876_v23 = vpack.c.bf16 %v1882_v22, %v1881_v20  ;;  %v843_v24 = vpop.f32.mrb[27].mxu0 }
 0x2bb   : > { %v875_v25 = vpack.c.bf16 %v843_v24, %v840_v21  ;;  %1994 = vmatpush3.bf16.msra.mxu1 %v2084_v37 }
 0x2bc   : > { %1987 = vmatprep.subr.bf16.mxu1 %v2085_v38 }
 0x2bd   : > { %1911 = vmatprep.mubr.bf16.mxu1 %v875_v25 }
 0x2be   : > { %1912 = vmatmul.mubr.bf16.gmra.mrb[24].mxu1 %v876_v23 }
 0x2bf   : > { %v1885_v26 = vpop.f32.mrb[28].mxu0  ;;  %1995 = vmatpush3.bf16.msra.mxu1 %v2085_v38 }
 0x2c0   : > { %v856_v27 = vpop.f32.mrb[29].mxu0  ;;  %1988 = vmatprep.subr.bf16.mxu1 %v2086_v39 }
 0x2c1   : > { %v1886_v28 = vpop.f32.mrb[30].mxu0 }
 0x2c2   : > { %v878_v29 = vpack.c.bf16 %v1886_v28, %v1885_v26  ;;  %v859_v30 = vpop.f32.mrb[31].mxu0 }
 0x2c3   : > { %v877_v31 = vpack.c.bf16 %v859_v30, %v856_v27  ;;  %1996 = vmatpush3.bf16.msra.mxu1 %v2086_v39 }
 0x2c4   : > { %1989 = vmatprep.subr.bf16.mxu1 %v2087_v16 }
 0x2c5   : > { %1915 = vmatprep.mubr.bf16.mxu1 %v877_v31 }
 0x2c6   : > { %1916 = vmatmul.mubr.bf16.gmra.mrb[28].mxu1 %v878_v29 }
 0x2c7   : > { %1997 = vmatpush3.bf16.msra.mxu1 %v2087_v16 }
 0x2c8   : > { %1990 = vmatprep.subr.bf16.mxu1 %v2088_v17 }
 0x2cb   : > { %1998 = vmatpush3.bf16.msra.mxu1 %v2088_v17 }
 0x381   : > { %v1905_v40 = vpop.f32.mrb[16].mxu1 }
 0x382   : > { %v977_v41 = vpop.f32.mrb[17].mxu1  ;;  %v1042_v43 = vmax.f32 %v1905_v40, 0.0 }
 0x383   : > { %v1906_v42 = vpop.f32.mrb[18].mxu1  ;;  %v1040_v46 = vmax.f32 %v977_v41, 0.0 }
 0x384   : > { %v1043_v44 = vmax.f32 %v1906_v42, 0.0  ;;  %v980_v45 = vpop.f32.mrb[19].mxu1 }
 0x385   : > { %v1041_v47 = vmax.f32 %v980_v45, 0.0 }
 0x386   : > { %v1057_v48 = vpack.c.bf16 %v1043_v44, %v1042_v43 }
 0x387   : > { %v1056_v49 = vpack.c.bf16 %v1041_v47, %v1040_v46 }
 0x389   : > { %v1909_v50 = vpop.f32.mrb[20].mxu1  ;;  %1935 = vmatprep.mubr.bf16.mxu0 %v1056_v49 }
 0x38a   : > { %v993_v51 = vpop.f32.mrb[21].mxu1  ;;  %1936 = vmatmul.mubr.bf16.vlgmr.msra.gmra.mrb[32].mxu0 %v1057_v48  ;;  %v1046_v53 = vmax.f32 %v1909_v50, 0.0 }
 0x38b   : > { %v1910_v52 = vpop.f32.mrb[22].mxu1  ;;  %1952 = vmatpush3.bf16.msra.mxu0 %v2081_v34  ;;  %v1044_v56 = vmax.f32 %v993_v51, 0.0 }
 0x38c   : > { %v1047_v54 = vmax.f32 %v1910_v52, 0.0  ;;  %v996_v55 = vpop.f32.mrb[23].mxu1  ;;  %1953 = vmatprep.subr.bf16.mxu0 %v2082_v35 }
 0x38d   : > { %v1045_v57 = vmax.f32 %v996_v55, 0.0 }
 0x38e   : > { %v1059_v58 = vpack.c.bf16 %v1047_v54, %v1046_v53 }
 0x38f   : > { %v1058_v59 = vpack.c.bf16 %v1045_v57, %v1044_v56  ;;  %1954 = vmatpush3.bf16.msra.mxu0 %v2082_v35 }
 0x390   : > { %1955 = vmatprep.subr.bf16.mxu0 %v2083_v36 }
 0x391   : > { %v1913_v60 = vpop.f32.mrb[24].mxu1  ;;  %1939 = vmatprep.mubr.bf16.mxu0 %v1058_v59 }
 0x392   : > { %v1009_v61 = vpop.f32.mrb[25].mxu1  ;;  %1940 = vmatmul.mubr.bf16.gmra.mrb[36].mxu0 %v1059_v58  ;;  %v1050_v63 = vmax.f32 %v1913_v60, 0.0 }
 0x393   : > { %v1914_v62 = vpop.f32.mrb[26].mxu1  ;;  %1956 = vmatpush3.bf16.msra.mxu0 %v2083_v36  ;;  %v1048_v2 = vmax.f32 %v1009_v61, 0.0 }
 0x394   : > { %v1051_v0 = vmax.f32 %v1914_v62, 0.0  ;;  %v1012_v1 = vpop.f32.mrb[27].mxu1  ;;  %1957 = vmatprep.subr.bf16.mxu0 %v2084_v37 }
 0x395   : > { %v1049_v3 = vmax.f32 %v1012_v1, 0.0 }
 0x396   : > { %v1061_v4 = vpack.c.bf16 %v1051_v0, %v1050_v63 }
 0x397   : > { %v1060_v5 = vpack.c.bf16 %v1049_v3, %v1048_v2  ;;  %1958 = vmatpush3.bf16.msra.mxu0 %v2084_v37 }
 0x398   : > { %1959 = vmatprep.subr.bf16.mxu0 %v2085_v38 }
 0x399   : > { %v1917_v6 = vpop.f32.mrb[28].mxu1  ;;  %1943 = vmatprep.mubr.bf16.mxu0 %v1060_v5 }
 0x39a   : > { %v1025_v7 = vpop.f32.mrb[29].mxu1  ;;  %1944 = vmatmul.mubr.bf16.gmra.mrb[40].mxu0 %v1061_v4  ;;  %v1054_v9 = vmax.f32 %v1917_v6, 0.0 }
 0x39b   : > { %v1918_v8 = vpop.f32.mrb[30].mxu1  ;;  %1960 = vmatpush3.bf16.msra.mxu0 %v2085_v38  ;;  %v1052_v12 = vmax.f32 %v1025_v7, 0.0 }
 0x39c   : > { %v1055_v10 = vmax.f32 %v1918_v8, 0.0  ;;  %v1028_v11 = vpop.f32.mrb[31].mxu1  ;;  %1961 = vmatprep.subr.bf16.mxu0 %v2086_v39 }
 0x39d   : > { %v1053_v13 = vmax.f32 %v1028_v11, 0.0 }
 0x39e   : > { %v1063_v14 = vpack.c.bf16 %v1055_v10, %v1054_v9 }
 0x39f   : > { %v1062_v15 = vpack.c.bf16 %v1053_v13, %v1052_v12  ;;  %1962 = vmatpush3.bf16.msra.mxu0 %v2086_v39 }
 0x3a0   : > { %1963 = vmatprep.subr.bf16.mxu0 %v2087_v16 }
 0x3a1   : > { %1947 = vmatprep.mubr.bf16.mxu0 %v1062_v15 }
 0x3a2   : > { %1948 = vmatmul.mubr.bf16.gmra.mrb[44].mxu0 %v1063_v14 }
 0x3a3   : > { %1964 = vmatpush3.bf16.msra.mxu0 %v2087_v16 }
 0x3a4   : > { %1965 = vmatprep.subr.bf16.mxu0 %v2088_v17 }
 0x3a7   : > { %1966 = vmatpush3.bf16.msra.mxu0 %v2088_v17 }
 0x45d   : > { %v1937_v18 = vpop.f32.mrb[32].mxu0 }
 0x45e   : > { %v1162_v19 = vpop.f32.mrb[33].mxu0  ;;  %v1227_v21 = vmax.f32 %v1937_v18, 0.0 }
 0x45f   : > { %v1938_v20 = vpop.f32.mrb[34].mxu0  ;;  %v1225_v24 = vmax.f32 %v1162_v19, 0.0 }
 0x460   : > { %v1228_v22 = vmax.f32 %v1938_v20, 0.0  ;;  %v1165_v23 = vpop.f32.mrb[35].mxu0 }
 0x461   : > { %v1226_v25 = vmax.f32 %v1165_v23, 0.0 }
 0x462   : > { %v1242_v26 = vpack.c.bf16 %v1228_v22, %v1227_v21 }
 0x463   : > { %v1241_v27 = vpack.c.bf16 %v1226_v25, %v1225_v24 }
 0x465   : > { %v1941_v28 = vpop.f32.mrb[36].mxu0  ;;  %1967 = vmatprep.mubr.bf16.mxu0 %v1241_v27 }
 0x466   : > { %v1178_v29 = vpop.f32.mrb[37].mxu0  ;;  %1968 = vmatmul.mubr.bf16.vlgmr.msra.gmra.mrb[48].mxu0 %v1242_v26  ;;  %v1231_v31 = vmax.f32 %v1941_v28, 0.0 }
 0x467   : > { %v1942_v30 = vpop.f32.mrb[38].mxu0  ;;  %v1229_v34 = vmax.f32 %v1178_v29, 0.0 }
 0x468   : > { %v1232_v32 = vmax.f32 %v1942_v30, 0.0  ;;  %v1181_v33 = vpop.f32.mrb[39].mxu0 }
 0x469   : > { %v1230_v35 = vmax.f32 %v1181_v33, 0.0 }
 0x46a   : > { %v1244_v36 = vpack.c.bf16 %v1232_v32, %v1231_v31 }
 0x46b   : > { %v1243_v37 = vpack.c.bf16 %v1230_v35, %v1229_v34 }
 0x46d   : > { %v1945_v38 = vpop.f32.mrb[40].mxu0  ;;  %1971 = vmatprep.mubr.bf16.mxu1 %v1243_v37 }
 0x46e   : > { %v1194_v39 = vpop.f32.mrb[41].mxu0  ;;  %1972 = vmatmul.mubr.bf16.vlgmr.msra.gmra.mrb[32].mxu1 %v1244_v36  ;;  %v1235_v41 = vmax.f32 %v1945_v38, 0.0 }
 0x46f   : > { %v1946_v40 = vpop.f32.mrb[42].mxu0  ;;  %v1233_v44 = vmax.f32 %v1194_v39, 0.0 }
 0x470   : > { %v1236_v42 = vmax.f32 %v1946_v40, 0.0  ;;  %v1197_v43 = vpop.f32.mrb[43].mxu0 }
 0x471   : > { %v1234_v45 = vmax.f32 %v1197_v43, 0.0 }
 0x472   : > { %v1246_v46 = vpack.c.bf16 %v1236_v42, %v1235_v41 }
 0x473   : > { %v1245_v47 = vpack.c.bf16 %v1234_v45, %v1233_v44 }
 0x475   : > { %v1949_v48 = vpop.f32.mrb[44].mxu0  ;;  %1975 = vmatprep.mubr.bf16.mxu1 %v1245_v47 }
 0x476   : > { %v1210_v49 = vpop.f32.mrb[45].mxu0  ;;  %1976 = vmatmul.mubr.bf16.gmra.mrb[36].mxu1 %v1246_v46  ;;  %v1239_v51 = vmax.f32 %v1949_v48, 0.0 }
 0x477   : > { %v1950_v50 = vpop.f32.mrb[46].mxu0  ;;  %v1237_v54 = vmax.f32 %v1210_v49, 0.0 }
 0x478   : > { %v1240_v52 = vmax.f32 %v1950_v50, 0.0  ;;  %v1213_v53 = vpop.f32.mrb[47].mxu0 }
 0x479   : > { %v1238_v55 = vmax.f32 %v1213_v53, 0.0 }
 0x47a   : > { %v1248_v56 = vpack.c.bf16 %v1240_v52, %v1239_v51 }
 0x47b   : > { %v1247_v57 = vpack.c.bf16 %v1238_v55, %v1237_v54 }
 0x47d   : > { %1979 = vmatprep.mubr.bf16.mxu1 %v1247_v57 }
 0x47e   : > { %1980 = vmatmul.mubr.bf16.gmra.mrb[40].mxu1 %v1248_v56 }
 0x539   : > { %v1969_v58 = vpop.f32.mrb[48].mxu0 }
 0x53a   : > { %v1347_v59 = vpop.f32.mrb[49].mxu0 }
 0x53b   : > { %v1970_v60 = vpop.f32.mrb[50].mxu0 }
 0x53c   : > { %v1677_v61 = vpack.c.bf16 %v1970_v60, %v1969_v58  ;;  %v1350_v62 = vpop.f32.mrb[51].mxu0 }
 0x53d   : > { %v1672_v63 = vpack.c.bf16 %v1350_v62, %v1347_v59 }
 0x53e   : > { %1709 = vst [vmem:[%s299_s10 + $0x8] sm:$0xff] %v1677_v61  }
 0x53f   : > { %1673 = vst [vmem:[%s299_s10] sm:$0xff] %v1672_v63  }
 0x541   : > { %v1973_v0 = vpop.f32.mrb[32].mxu1 }
 0x542   : > { %v1363_v1 = vpop.f32.mrb[33].mxu1 }
 0x543   : > { %v1974_v2 = vpop.f32.mrb[34].mxu1 }
 0x544   : > { %v1687_v3 = vpack.c.bf16 %v1974_v2, %v1973_v0  ;;  %v1366_v4 = vpop.f32.mrb[35].mxu1 }
 0x545   : > { %v1682_v5 = vpack.c.bf16 %v1366_v4, %v1363_v1 }
 0x546   : > { %1711 = vst [vmem:[%s299_s10 + $0x18] sm:$0xff] %v1687_v3  }
 0x547   : > { %1710 = vst [vmem:[%s299_s10 + $0x10] sm:$0xff] %v1682_v5  }
 0x549   : > { %v1977_v6 = vpop.f32.mrb[36].mxu1 }
 0x54a   : > { %v1379_v7 = vpop.f32.mrb[37].mxu1 }
 0x54b   : > { %v1978_v8 = vpop.f32.mrb[38].mxu1 }
 0x54c   : > { %v1697_v9 = vpack.c.bf16 %v1978_v8, %v1977_v6  ;;  %v1382_v10 = vpop.f32.mrb[39].mxu1 }
 0x54d   : > { %v1692_v11 = vpack.c.bf16 %v1382_v10, %v1379_v7 }
 0x54e   : > { %1713 = vst [vmem:[%s299_s10 + $0x28] sm:$0xff] %v1697_v9  }
 0x54f   : > { %1712 = vst [vmem:[%s299_s10 + $0x20] sm:$0xff] %v1692_v11  }
 0x551   : > { %v1981_v12 = vpop.f32.mrb[40].mxu1 }
 0x552   : > { %v1395_v13 = vpop.f32.mrb[41].mxu1 }
 0x553   : > { %v1982_v14 = vpop.f32.mrb[42].mxu1 }
 0x554   : > { %v1707_v15 = vpack.c.bf16 %v1982_v14, %v1981_v12  ;;  %v1398_v16 = vpop.f32.mrb[43].mxu1 }
 0x555   : > { %v1702_v17 = vpack.c.bf16 %v1398_v16, %v1395_v13 }
 0x556   : > { %1715 = vst [vmem:[%s299_s10 + $0x38] sm:$0xff] %v1707_v15  }
 0x557   : > { %1714 = vst [vmem:[%s299_s10 + $0x30] sm:$0xff] %v1702_v17  }
 0x558   : > { %2102 = shalt.err (!%p2099_p3)
}
 0x559   : > { %s2103_s12 = scalar_lea.hbm %s2394_s22, 1024  ;;  %s2107_s10 = scalar_lea.hbm %s2449_s8, 8192 }
 0x55a   : > { %p2104_p4 = scmp.ne.s32.totalorder %s2394_s22, %s2103_s12  ;;  %p2108_p9 = scmp.lt.u32.totalorder %s2394_s22, %s2449_s8 }
 0x55b   : > { %p2109_p10 = scmp.lt.u32.totalorder %s2107_s10, %s2103_s12  ;;  %p2111_p12 = scmp.lt.u32.totalorder %s2103_s12, %s2394_s22 }
 0x55c   : > { %p2105_p7 = pnand %p2104_p4, %p2239_p5 }
 0x55d   : > { %p2110_p11 = por %p2109_p10, %p2108_p9 }
 0x55e   : > { %p2106_p8 = pneg %p2105_p7 }
 0x55f   : > { %p2112_p13 = por %p2111_p12, %p2110_p11 }
 0x561   : > { %p2113_p0 = pnand %p2112_p13, %p2106_p8 }
 0x563   : > { %2116 = shalt.err (!%p2113_p0)
}
 0x564   : > { %s2154_s21 = smov 64   ;;  %s2155_s23 = smov 4  }
 0x565   : > { %1999 = dma.vmem_to_hbm [thread:$0]  (%p2239_p5), %s2396_s19, 1024, %s2394_s22, %s2400_s9, %s2154_s21, %s2154_s21, %s2155_s23  }
 0x566 PF: > { %p2005_p1 = scmp.ge.s32.totalorder %s2151_s30, 2  ;;  %s1519_s24 = sand.u32 1, %s2139_s27  }
 0x567   : > { %s1520_s25 = scalar_lea.sflag [#allocation3], %s1519_s24 }
 0x568   : > { %p2002_p2 = pnand %p2005_p1, %p2243_p6 }
 0x56a   : > { %2134 = dma.done.wait (!%p2002_p2), %s1520_s25, 1024  }
 0x56b   : > { %2136 = vsyncadd (!%p2002_p2), %s1520_s25, 4294966272  ;;  %p18_p3 = scmp.ge.s32.totalorder %s2226_s11, 10   ;;  %s2452_s27 = smov %s2143_s28 }
 0x56c   : > { %s2453_s28 = smov %s2147_s29  ;;  %s2454_s29 = smov %s2237_s14 }
 0x56d   : > { %s2455_s30 = smov %s2226_s11  ;;  %20 = sbr.rel (!%p18_p3) target bundleno = 3 (0x3), region = 87 }
 0x574   :  { %1525 = vsyncpa [#allocation3], 1 }
 0x575   :  { %1527 = vsyncpa [#allocation3 + $0x1], 1 }

</bundles_post_ra>
